<compile_context>
chip_gen: v7x
topology: tpu7x:2x2x1
jax: 0.10.0
libtpu: 0.0.40
codegen_flags: <defaults>
</compile_context>

<pallas_src>
import functools

import jax
import jax.numpy as jnp
import numpy as np
from jax.experimental import pallas as pl
from jax.experimental.pallas import tpu as pltpu


def _haar_squeeze_split_kernel(a_ref, b_ref, c_ref, d_ref, base_ref, det_ref,
                               *, base_scale):
    # a,b,c,d are the 4 corners of each 2x2 block:
    #   a = x[0::2,0::2], b = x[0::2,1::2], c = x[1::2,0::2], d = x[1::2,1::2]
    # Compute in the native input dtype (bf16 stays bf16 on v6e/v7x VPUs).
    a = a_ref[...]
    b = b_ref[...]
    c = c_ref[...]
    d = d_ref[...]

    # Haar butterfly: 8 adds instead of 12; a,b,c,d die early (less vreg pressure).
    s1 = a + b
    d1 = a - b
    s2 = c + d
    d2 = c - d

    ll = (s1 + s2) * (0.25 * base_scale)   # LL (average) band -> base
    lh = (d1 + d2) * 0.25                  # LH (horizontal detail)
    hl = (s1 - s2) * 0.25                  # HL (vertical detail)
    hh = (d1 - d2) * 0.25                  # HH (diagonal detail)

    base_ref[...] = ll.astype(base_ref.dtype)
    if len(det_ref.shape) == 3:            # flattened layout: (nt, 3, ft)
        det_ref[:, 0, :] = lh.astype(det_ref.dtype)
        det_ref[:, 1, :] = hl.astype(det_ref.dtype)
        det_ref[:, 2, :] = hh.astype(det_ref.dtype)
    else:                                  # layout: (nt, 3, ct, lt)
        det_ref[:, 0, :, :] = lh.astype(det_ref.dtype)
        det_ref[:, 1, :, :] = hl.astype(det_ref.dtype)
        det_ref[:, 2, :, :] = hh.astype(det_ref.dtype)


def _choose_tiles_3d(n, c, l, max_block_elems=128 * 1024):
    """Tiles for the (N, C, L) layout. Returns (nt, ct, lt)."""
    lt = l if l <= 2048 else 2048                       # multiple of 128, or full dim
    rows_budget = max(1, max_block_elems // lt)
    if c <= 8:
        ct = c                                          # full dim
    else:
        ct = max(8, (min(c, rows_budget) // 8) * 8)     # multiple of 8
    nt = max(1, min(n, rows_budget // max(ct, 1)))
    return nt, ct, lt


def _choose_tiles_2d(n, f, max_block_elems=128 * 1024):
    """Tiles for the flattened (N, F) layout. Returns (nt, ft)."""
    if n <= 8:
        nt = n                                          # full dim
    else:
        nt = max(8, (min(n, max(1, max_block_elems // max(f, 1))) // 8) * 8)
    max_ft = max(128, max_block_elems // nt)
    ft = f if f <= max_ft else (max_ft // 128) * 128    # multiple of 128, or full dim
    return nt, ft


def squeeze_split(x, compensate=False):
    """x: (N, C, H, W) float array. Returns dict(base, details, ldj)."""
    N, C, H, W = x.shape
    assert H % 2 == 0 and W % 2 == 0, "H and W must be even"
    H2, W2 = H // 2, W // 2
    L = H2 * W2
    F = C * L

    if not jnp.issubdtype(x.dtype, jnp.floating):
        x = x.astype(jnp.float32)
    out_dtype = x.dtype

    # 2x2 even/odd de-interleave (pure slicing, zero FLOPs). The reshapes are free
    # (contiguous); allow_input_fusion lets XLA fuse slice+reshape into the Pallas
    # input DMAs instead of materializing 4 corner tensors in HBM.
    a = x[:, :, 0::2, 0::2]
    b = x[:, :, 0::2, 1::2]
    c = x[:, :, 1::2, 0::2]
    d = x[:, :, 1::2, 1::2]

    if L >= 128:
        # Channels on sublanes, flattened spatial plane on lanes.
        corners = [t.reshape(N, C, L) for t in (a, b, c, d)]
        nt, ct, lt = _choose_tiles_3d(N, C, L)
        grid = (pl.cdiv(N, nt), pl.cdiv(C, ct), pl.cdiv(L, lt))
        corner_spec = pl.BlockSpec((nt, ct, lt), lambda i, k, j: (i, k, j))
        base_shape = jax.ShapeDtypeStruct((N, C, L), out_dtype)
        base_spec = pl.BlockSpec((nt, ct, lt), lambda i, k, j: (i, k, j))
        det_shape = jax.ShapeDtypeStruct((N, 3, C, L), out_dtype)
        det_spec = pl.BlockSpec((nt, 3, ct, lt), lambda i, k, j: (i, 0, k, j))
    else:
        # Tiny spatial plane: flatten (C, H2, W2) so the lane dim stays wide.
        corners = [t.reshape(N, F) for t in (a, b, c, d)]
        nt, ft = _choose_tiles_2d(N, F)
        grid = (pl.cdiv(N, nt), pl.cdiv(F, ft))
        corner_spec = pl.BlockSpec((nt, ft), lambda i, j: (i, j))
        base_shape = jax.ShapeDtypeStruct((N, F), out_dtype)
        base_spec = pl.BlockSpec((nt, ft), lambda i, j: (i, j))
        det_shape = jax.ShapeDtypeStruct((N, 3, F), out_dtype)
        det_spec = pl.BlockSpec((nt, 3, ft), lambda i, j: (i, 0, j))

    base_scale = 0.5 if compensate else 1.0
    kernel = functools.partial(_haar_squeeze_split_kernel, base_scale=base_scale)

    total = N * C * H * W
    itemsize = jnp.dtype(out_dtype).itemsize
    cost = pl.CostEstimate(flops=3 * total, transcendentals=0,
                           bytes_accessed=2 * total * itemsize)

    base_flat, det_flat = pl.pallas_call(
        kernel,
        out_shape=(base_shape, det_shape),
        grid=grid,
        in_specs=[corner_spec] * 4,
        out_specs=(base_spec, det_spec),
        compiler_params=pltpu.CompilerParams(
            dimension_semantics=("parallel",) * len(grid),
            allow_input_fusion=[True, True, True, True],
            vmem_limit_bytes=32 * 1024 * 1024,
        ),
        cost_estimate=cost,
    )(*corners)

    # Free reshapes back to NCHW band-major layout (LH|HL|HH blocks of C channels).
    base = base_flat.reshape(N, C, H2, W2)
    details = det_flat.reshape(N, 3 * C, H2, W2)

    # ldj is always a jnp.float32 scalar (consistent dtype under jit).
    if compensate:
        ldj = jnp.asarray(np.log(0.5) * F, dtype=jnp.float32)
    else:
        ldj = jnp.zeros((), dtype=jnp.float32)
    return {"base": base, "details": details, "ldj": ldj}


def _reference(x, compensate=False):
    """Pure-JAX reference for correctness checking."""
    a = x[:, :, 0::2, 0::2]
    b = x[:, :, 0::2, 1::2]
    c = x[:, :, 1::2, 0::2]
    d = x[:, :, 1::2, 1::2]
    ll = (a + b + c + d) * 0.25
    lh = (a - b + c - d) * 0.25
    hl = (a + b - c - d) * 0.25
    hh = (a - b - c + d) * 0.25
    base = ll * (0.5 if compensate else 1.0)
    details = jnp.concatenate([lh, hl, hh], axis=1)
    return base, details


if __name__ == "__main__":
    key = jax.random.PRNGKey(0)

    # Small image -> flattened lane-dense path (L = 64 < 128).
    x = jax.random.normal(key, (2, 4, 16, 16), dtype=jnp.float32)
    out = squeeze_split(x, compensate=False)
    base = jax.block_until_ready(out["base"])
    details = jax.block_until_ready(out["details"])
    ref_base, ref_details = _reference(x, compensate=False)
    np.testing.assert_allclose(np.asarray(base), np.asarray(ref_base),
                               rtol=1e-5, atol=1e-5)
    np.testing.assert_allclose(np.asarray(details), np.asarray(ref_details),
                               rtol=1e-5, atol=1e-5)
    assert base.shape == (2, 4, 8, 8) and details.shape == (2, 12, 8, 8)

    # compensate=True path (base scaled inside the kernel, ldj scalar).
    out_c = squeeze_split(x, compensate=True)
    base_c = jax.block_until_ready(out_c["base"])
    ref_base_c, _ = _reference(x, compensate=True)
    np.testing.assert_allclose(np.asarray(base_c), np.asarray(ref_base_c),
                               rtol=1e-5, atol=1e-5)
    np.testing.assert_allclose(float(out_c["ldj"]), np.log(0.5) * 4 * 8 * 8, rtol=1e-5)

    # Larger spatial plane -> channel-sublane / spatial-lane path (L = 256).
    x2 = jax.random.normal(jax.random.PRNGKey(1), (2, 4, 32, 32), dtype=jnp.float32)
    out2 = squeeze_split(x2, compensate=False)
    base2 = jax.block_until_ready(out2["base"])
    details2 = jax.block_until_ready(out2["details"])
    ref_base2, ref_details2 = _reference(x2, compensate=False)
    np.testing.assert_allclose(np.asarray(base2), np.asarray(ref_base2),
                               rtol=1e-5, atol=1e-5)
    np.testing.assert_allclose(np.asarray(details2), np.asarray(ref_details2),
                               rtol=1e-5, atol=1e-5)

    # bf16 path: native bf16 compute in-kernel (v6e/v7x bf16 VALU; v5e legalizes).
    xb = x.astype(jnp.bfloat16)
    outb = squeeze_split(xb, compensate=False)
    baseb = jax.block_until_ready(outb["base"])
    jax.block_until_ready(outb["details"])
    np.testing.assert_allclose(np.asarray(baseb, dtype=np.float32),
                               np.asarray(ref_base), rtol=5e-2, atol=5e-2)

    print("KERNEL_OK")
</pallas_src>

<mosaic_0001>
module attributes {stable_mosaic.version = 11 : i64} {
  func.func @_haar_squeeze_split_kernel(%arg0: i32, %arg1: i32, %arg2: memref<2x256xf32, #tpu.memory_space<vmem>>, %arg3: memref<2x256xf32, #tpu.memory_space<vmem>>, %arg4: memref<2x256xf32, #tpu.memory_space<vmem>>, %arg5: memref<2x256xf32, #tpu.memory_space<vmem>>, %arg6: memref<2x256xf32, #tpu.memory_space<vmem>>, %arg7: memref<2x3x256xf32, #tpu.memory_space<vmem>>) attributes {dimension_semantics = [#tpu.dimension_semantics<parallel>, #tpu.dimension_semantics<parallel>], iteration_bounds = array<i64: 1, 1>, scalar_prefetch = 0 : i64, scratch_operands = 0 : i64, tpu.core_type = #tpu.core_type<tc>, window_params = [{transform_indices = @transform_0, window_bounds = array<i64: 2, 256>}, {transform_indices = @transform_1, window_bounds = array<i64: 2, 256>}, {transform_indices = @transform_2, window_bounds = array<i64: 2, 256>}, {transform_indices = @transform_3, window_bounds = array<i64: 2, 256>}, {transform_indices = @transform_4, window_bounds = array<i64: 2, 256>}, {transform_indices = @transform_5, window_bounds = array<i64: 2, 3, 256>}]} {
    %c0 = arith.constant 0 : index
    %c0_0 = arith.constant 0 : index
    %0 = vector.load %arg2[%c0, %c0_0] : memref<2x256xf32, #tpu.memory_space<vmem>>, vector<2x256xf32>
    %c0_1 = arith.constant 0 : index
    %c0_2 = arith.constant 0 : index
    %1 = vector.load %arg3[%c0_1, %c0_2] : memref<2x256xf32, #tpu.memory_space<vmem>>, vector<2x256xf32>
    %c0_3 = arith.constant 0 : index
    %c0_4 = arith.constant 0 : index
    %2 = vector.load %arg4[%c0_3, %c0_4] : memref<2x256xf32, #tpu.memory_space<vmem>>, vector<2x256xf32>
    %c0_5 = arith.constant 0 : index
    %c0_6 = arith.constant 0 : index
    %3 = vector.load %arg5[%c0_5, %c0_6] : memref<2x256xf32, #tpu.memory_space<vmem>>, vector<2x256xf32>
    %4 = arith.addf %0, %1 : vector<2x256xf32>
    %5 = arith.subf %0, %1 : vector<2x256xf32>
    %6 = arith.addf %2, %3 : vector<2x256xf32>
    %7 = arith.subf %2, %3 : vector<2x256xf32>
    %8 = arith.addf %4, %6 : vector<2x256xf32>
    %cst = arith.constant 2.500000e-01 : f32
    %9 = vector.broadcast %cst : f32 to vector<2x256xf32>
    %10 = arith.mulf %8, %9 : vector<2x256xf32>
    %11 = arith.addf %5, %7 : vector<2x256xf32>
    %cst_7 = arith.constant 2.500000e-01 : f32
    %12 = vector.broadcast %cst_7 : f32 to vector<2x256xf32>
    %13 = arith.mulf %11, %12 : vector<2x256xf32>
    %14 = arith.subf %4, %6 : vector<2x256xf32>
    %cst_8 = arith.constant 2.500000e-01 : f32
    %15 = vector.broadcast %cst_8 : f32 to vector<2x256xf32>
    %16 = arith.mulf %14, %15 : vector<2x256xf32>
    %17 = arith.subf %5, %7 : vector<2x256xf32>
    %cst_9 = arith.constant 2.500000e-01 : f32
    %18 = vector.broadcast %cst_9 : f32 to vector<2x256xf32>
    %19 = arith.mulf %17, %18 : vector<2x256xf32>
    %c0_10 = arith.constant 0 : index
    %c0_11 = arith.constant 0 : index
    %20 = vector.load %arg6[%c0_10, %c0_11] : memref<2x256xf32, #tpu.memory_space<vmem>>, vector<2x256xf32>
    tpu.vector_store %arg6[%c0_10, %c0_11], %10 {strides = array<i32>} : memref<2x256xf32, #tpu.memory_space<vmem>>, vector<2x256xf32>,
    %c0_12 = arith.constant 0 : index
    %c0_13 = arith.constant 0 : index
    %c0_14 = arith.constant 0 : index
    %21 = vector.load %arg7[%c0_12, %c0_13, %c0_14] : memref<2x3x256xf32, #tpu.memory_space<vmem>>, vector<2x1x256xf32>
    %22 = vector.shape_cast %21 : vector<2x1x256xf32> to vector<2x256xf32>
    %23 = vector.shape_cast %13 : vector<2x256xf32> to vector<2x1x256xf32>
    tpu.vector_store %arg7[%c0_12, %c0_13, %c0_14], %23 {strides = array<i32>} : memref<2x3x256xf32, #tpu.memory_space<vmem>>, vector<2x1x256xf32>,
    %c0_15 = arith.constant 0 : index
    %c1 = arith.constant 1 : index
    %c0_16 = arith.constant 0 : index
    %24 = vector.load %arg7[%c0_15, %c1, %c0_16] : memref<2x3x256xf32, #tpu.memory_space<vmem>>, vector<2x1x256xf32>
    %25 = vector.shape_cast %24 : vector<2x1x256xf32> to vector<2x256xf32>
    %26 = vector.shape_cast %16 : vector<2x256xf32> to vector<2x1x256xf32>
    tpu.vector_store %arg7[%c0_15, %c1, %c0_16], %26 {strides = array<i32>} : memref<2x3x256xf32, #tpu.memory_space<vmem>>, vector<2x1x256xf32>,
    %c0_17 = arith.constant 0 : index
    %c2 = arith.constant 2 : index
    %c0_18 = arith.constant 0 : index
    %27 = vector.load %arg7[%c0_17, %c2, %c0_18] : memref<2x3x256xf32, #tpu.memory_space<vmem>>, vector<2x1x256xf32>
    %28 = vector.shape_cast %27 : vector<2x1x256xf32> to vector<2x256xf32>
    %29 = vector.shape_cast %19 : vector<2x256xf32> to vector<2x1x256xf32>
    tpu.vector_store %arg7[%c0_17, %c2, %c0_18], %29 {strides = array<i32>} : memref<2x3x256xf32, #tpu.memory_space<vmem>>, vector<2x1x256xf32>,
    return
  }
  func.func @transform_0(%arg0: i32, %arg1: i32) -> (i32, i32) {
    %c0_i32 = arith.constant 0 : i32
    return %arg0, %arg1 : i32, i32
  }
  func.func @transform_1(%arg0: i32, %arg1: i32) -> (i32, i32) {
    %c0_i32 = arith.constant 0 : i32
    return %arg0, %arg1 : i32, i32
  }
  func.func @transform_2(%arg0: i32, %arg1: i32) -> (i32, i32) {
    %c0_i32 = arith.constant 0 : i32
    return %arg0, %arg1 : i32, i32
  }
  func.func @transform_3(%arg0: i32, %arg1: i32) -> (i32, i32) {
    %c0_i32 = arith.constant 0 : i32
    return %arg0, %arg1 : i32, i32
  }
  func.func @transform_4(%arg0: i32, %arg1: i32) -> (i32, i32) {
    %c0_i32 = arith.constant 0 : i32
    return %arg0, %arg1 : i32, i32
  }
  func.func @transform_5(%arg0: i32, %arg1: i32) -> (i32, i32, i32) {
    %c0_i32 = arith.constant 0 : i32
    %c0_i32_0 = arith.constant 0 : i32
    return %arg0, %c0_i32, %arg1 : i32, i32, i32
  }
}

</mosaic_0001>

<bundles_post_ra>
// kernel: tpu_custom_call.1
= control target key start
LH: loop header
LB: loop body
LE: loop exit
PB: predicated region body
PF: predicated region fallthrough
CT: control target
= control target key end

     0   :  { %11 = vsyncpa [#allocation3], 0  ;;  %s320_s0 = inlined_call_operand.hbm [shape: f32[2,256], index: 0, kind: input, shape index: {}]   ;;  %s321_s1 = inlined_call_operand.hbm [shape: f32[2,256], index: 1, kind: input, shape index: {}]   ;;  %s322_s2 = inlined_call_operand.vmem [shape: f32[2,256], index: 2, kind: input, shape index: {}]   ;;  %s323_s3 = inlined_call_operand.vmem [shape: f32[2,256], index: 3, kind: input, shape index: {}]   ;;  %s324_s4 = inlined_call_operand.hbm [shape: f32[2,256], index: 4, kind: output, shape index: {0}]   ;;  %s325_s5 = inlined_call_operand.vmem [shape: f32[2,3,256], index: 5, kind: output, shape index: {1}]  }
   0x1   :  { %12 = vsyncpa [#allocation6], 0 }
   0x2   :  { %13 = vsyncpa [#allocation4], 0  ;;  %s210_s18 = smov [#allocation2]   ;;  %s211_s20 = smov [#allocation5]  }
   0x3   :  { %s20_s19 = sshll.u32 %s210_s18, 4  ;;  %s30_s21 = sshll.u32 %s211_s20, 4  ;;  %s21_s19 = int_to_ptr.vmem [resolvable:$true] %s20_s19  ;;  %s31_s21 = int_to_ptr.vmem [resolvable:$true] %s30_s21 }
   0x4   :  { %s138_s24 = scalar_lea.hbm %s320_s0, 64 }
   0x5   :  { %p139_p0 = scmp.ne.s32.totalorder %s320_s0, %s138_s24  ;;  %p142_p1 = scmp.lt.u32.totalorder %s138_s24, %s320_s0 }
   0x7   :  { %p144_p2 = pnand %p142_p1, %p139_p0 }
   0x9   :  { %147 = shalt.err (!%p144_p2)
}
   0xa   :  { %s148_s29 = scalar_lea.vmem %s21_s19, 64  ;;  %p153_p4 = scmp.lt.s32.totalorder %s21_s19, %s21_s19 }
   0xb   :  { %p149_p3 = scmp.ne.s32.totalorder %s21_s19, %s148_s29  ;;  %p154_p5 = scmp.lt.s32.totalorder %s148_s29, %s148_s29 }
   0xd   :  { %p155_p6 = por %p154_p5, %p153_p4 }
   0xf   :  { %p156_p7 = pnand %p155_p6, %p149_p3 }
  0x11   :  { %159 = shalt.err (!%p156_p7)
}
  0x12   :  { %23 = dma.hbm_to_vmem [thread:$0]  %s320_s0, 64, %s21_s19, [#allocation3]  }
  0x13   :  { %s160_s9 = scalar_lea.hbm %s321_s1, 64 }
  0x14   :  { %p161_p8 = scmp.ne.s32.totalorder %s321_s1, %s160_s9  ;;  %p164_p9 = scmp.lt.u32.totalorder %s160_s9, %s321_s1 }
  0x16   :  { %p166_p10 = pnand %p164_p9, %p161_p8 }
  0x18   :  { %169 = shalt.err (!%p166_p10)
}
  0x19   :  { %s170_s14 = scalar_lea.vmem %s31_s21, 64  ;;  %p175_p12 = scmp.lt.s32.totalorder %s31_s21, %s31_s21 }
  0x1a   :  { %p171_p11 = scmp.ne.s32.totalorder %s31_s21, %s170_s14  ;;  %p176_p13 = scmp.lt.s32.totalorder %s170_s14, %s170_s14 }
  0x1c   :  { %p177_p0 = por %p176_p13, %p175_p12 }
  0x1e   :  { %p178_p1 = pnand %p177_p0, %p171_p11 }
  0x20   :  { %181 = shalt.err (!%p178_p1)
}
  0x21   :  { %33 = dma.hbm_to_vmem [thread:$0]  %s321_s1, 64, %s31_s21, [#allocation6]  }
  0x22   :  { %204 = dma.done.wait [#allocation3], 64  }
  0x23   :  { %205 = vsyncadd [#allocation3], 4294967232 }
  0x24   :  { %206 = dma.done.wait [#allocation6], 64  }
  0x25   :  { %207 = vsyncadd [#allocation6], 4294967232  ;;  %v212_v0 = vmov 1966171168   ;;  %v65_v2 = vlaneseq  ;;  %v44_v5 = vld [vmem:[#allocation2] sm:$0xf] }
  0x26   :  { %v63_v1 = vunpack.c.l.s4 %v212_v0  ;;  %v45_v6 = vld [vmem:[#allocation5] sm:$0xf]  ;;  %v46_v7 = vld [vmem:[%s322_s2] sm:$0xf]  ;;  %s213_s1 = smov [#allocation7]  }
  0x27   :  { %v66_v4 = vshrl.u32 %v65_v2, 7  ;;  %v47_v8 = vld [vmem:[%s323_s3] sm:$0xf]  ;;  %v48_v9 = vadd.f32 %v45_v6, %v44_v5  ;;  %v49_v10 = vsub.f32 %v44_v5, %v45_v6  ;;  %s115_s20 = sshll.u32 %s213_s1, 4  ;;  %vm274_vm0 = vcmp.lt.s32.totalorder %v65_v2, 256  ;;  %s116_s20 = int_to_ptr.vmem [resolvable:$true] %s115_s20 }
  0x28   :  { %v64_v3 = vunpack.c.0.s8 %v63_v1  ;;  %v50_v11 = vadd.f32 %v47_v8, %v46_v7  ;;  %v51_v12 = vsub.f32 %v46_v7, %v47_v8  ;;  %s182_s2 = scalar_lea.vmem %s116_s20, 64  ;;  %p187_p3 = scmp.lt.s32.totalorder %s116_s20, %s116_s20 }
  0x29   :  { %p183_p2 = scmp.ne.s32.totalorder %s116_s20, %s182_s2  ;;  %p188_p4 = scmp.lt.s32.totalorder %s182_s2, %s182_s2 }
  0x2a   :  { %v67_v13 = vsub.s32 %v64_v3, %v66_v4  ;;  %v52_v14 = vadd.f32 %v50_v11, %v48_v9  ;;  %v56_v15 = vsub.f32 %v48_v9, %v50_v11  ;;  %v54_v16 = vadd.f32 %v51_v12, %v49_v10 }
  0x2b   :  { %v58_v17 = vsub.f32 %v49_v10, %v51_v12  ;;  %p189_p5 = por %p188_p4, %p187_p3 }
  0x2c   :  { %v53_v18 = vmul.f32 0.25, %v52_v14  ;;  %v55_v19 = vmul.f32 0.25, %v54_v16  ;;  %v57_v20 = vmul.f32 0.25, %v56_v15 }
  0x2d   :  { %v59_v21 = vmul.f32 0.25, %v58_v17  ;;  %p190_p6 = pnand %p189_p5, %p183_p2 }
  0x2e   :  { %60 = vst [vmem:[#allocation7] sm:$0xf] %v53_v18  ;;  %v68_v23 = vrot.slane %v55_v19, %v67_v13  ;;  %v86_v24 = vrot.slane %v57_v20, %v67_v13 }
  0x2f   :  { %v101_v25 = vrot.slane %v59_v21, %v67_v13 }
  0x30   :  { %193 = shalt.err (!%p190_p6)
}
  0x31   :  { %s194_s22 = scalar_lea.hbm %s324_s4, 64 }
  0x32   :  { %p195_p7 = scmp.ne.s32.totalorder %s324_s4, %s194_s22  ;;  %p198_p8 = scmp.lt.u32.totalorder %s194_s22, %s324_s4 }
  0x34   :  { %p200_p9 = pnand %p198_p8, %p195_p7 }
  0x36   :  { %203 = shalt.err (!%p200_p9)
}
  0x37   :  { %118 = dma.vmem_to_hbm [thread:$0]  %s116_s20, 64, %s324_s4, [#allocation4]   ;;  %76 = vst.msk [vmem:[%s325_s5] ss:$4 sm:$0x3] %vm274_vm0, %v68_v23  ;;  %v69_v26 = vcombine.high %v68_v23, %v68_v23  ;;  %v87_v27 = vcombine.high %v86_v24, %v86_v24  ;;  %v102_v28 = vcombine.high %v101_v25, %v101_v25 }
  0x38   :  { %130 = vst.msk [vmem:[%s325_s5 + $0x1] ss:$4 sm:$0x3] %vm274_vm0, %v86_v24  ;;  %132 = vst.msk [vmem:[%s325_s5 + $0x2] ss:$4 sm:$0x3] %vm274_vm0, %v101_v25 }
  0x39   :  { %129 = vst.msk [vmem:[%s325_s5 + $0x8] ss:$4 sm:$0x3] %vm274_vm0, %v69_v26  ;;  %131 = vst.msk [vmem:[%s325_s5 + $0x9] ss:$4 sm:$0x3] %vm274_vm0, %v87_v27 }
  0x3a   :  { %133 = vst.msk [vmem:[%s325_s5 + $0xa] ss:$4 sm:$0x3] %vm274_vm0, %v102_v28 }
  0x3b   :  { %208 = dma.done.wait [#allocation4], 64  }
  0x3c   :  { %209 = vsyncadd [#allocation4], 4294967232 }
  0x3d   :  { %126 = vsyncpa [#allocation3], 1 }
  0x3e   :  { %127 = vsyncpa [#allocation6], 1 }
  0x3f   :  { %128 = vsyncpa [#allocation4], 1 }

</bundles_post_ra>
